<compile_context>
chip_gen: v6e
topology: v6e:2x2x1
jax: 0.10.0
libtpu: 0.0.40
codegen_flags: <defaults>
</compile_context>

<pallas_src>
import functools

import jax
import jax.numpy as jnp
from jax import lax
from jax.experimental import pallas as pl
from jax.experimental.pallas import tpu as pltpu

EPS = 1e-5
_CHUNK = 256                 # lanes per in-kernel strip (live set ~12-24 vregs)
_TM_MAX = 32768              # lanes per grid tile (<= ~11.3 MiB double-buffered)
_VMEM_LIMIT = 32 * 1024 * 1024


def _round_up(x, m):
    return ((x + m - 1) // m) * m


def _make_kernel(n_chunks):
    """Build the fused kernel for a tile of TM = n_chunks * _CHUNK lanes."""

    def kernel(scal_ref, wd_ref, bd_ref, x_ref, o_ref):
        # scal_ref : SMEM f32[24] = [w1f(9 row-major), b1f(3), w2f(9), b2f(3)]
        # wd_ref   : VMEM (7, 8) dense weight ; bd_ref : VMEM (7, 1) dense bias
        # x_ref    : VMEM (3, 8, TM) input (channels, W, lanes=M tile)
        # o_ref    : VMEM (3, 7, TM) output

        # Hoist all scalar reads / small param loads above the strip loop.
        s = [scal_ref[i] for i in range(24)]
        wd = wd_ref[...]
        bd = bd_ref[...]

        def strip(t):
            off = t * _CHUNK
            if not isinstance(off, int):
                off = pl.multiple_of(off, _CHUNK)
            x0 = x_ref[0, :, pl.ds(off, _CHUNK)]
            x1 = x_ref[1, :, pl.ds(off, _CHUNK)]
            x2 = x_ref[2, :, pl.ds(off, _CHUNK)]

            # conv1 (1x1, BN scale/shift + bias folded) + ReLU : unrolled VPU FMAs
            a1 = [jnp.maximum(s[3 * o] * x0 + s[3 * o + 1] * x1
                              + s[3 * o + 2] * x2 + s[9 + o], 0.0)
                  for o in range(3)]
            # conv2 (1x1, folded) + ReLU
            a2 = [jnp.maximum(s[12 + 3 * o] * a1[0] + s[12 + 3 * o + 1] * a1[1]
                              + s[12 + 3 * o + 2] * a1[2] + s[21 + o], 0.0)
                  for o in range(3)]
            # dense Linear(8, 7): (7,8) @ (8,CHUNK) on the MXU, per channel
            for c in range(3):
                o_ref[c, :, pl.ds(off, _CHUNK)] = (
                    jnp.dot(wd, a2[c], preferred_element_type=jnp.float32) + bd)

        if n_chunks == 1:
            strip(0)
        else:
            def body(t, carry):
                strip(t)
                return carry
            lax.fori_loop(0, n_chunks, body, 0, unroll=(n_chunks <= 8))

    return kernel


@jax.jit
def advanced_model_forward(x_nchw, params):
    (w1, b1, g1, be1, m1, v1,
     w2, b2, g2, be2, m2, v2, wd, bd) = params

    N, C, H, W = x_nchw.shape
    assert C == 3 and W == 8

    # ---- fold BN (eval mode) + conv bias into the 1x1 conv weights (exact) ----
    s1 = g1 / jnp.sqrt(v1 + EPS)
    w1f = s1[:, None] * w1
    b1f = s1 * (b1 - m1) + be1
    s2 = g2 / jnp.sqrt(v2 + EPS)
    w2f = s2[:, None] * w2
    b2f = s2 * (b2 - m2) + be2
    scal = jnp.concatenate(
        [w1f.reshape(-1), b1f, w2f.reshape(-1), b2f]).astype(jnp.float32)

    # ---- lane-dense relayout: NCHW -> (C, W, M), M = N*H on the lane axis ----
    M = N * H
    x_cwm = jnp.transpose(x_nchw, (1, 3, 0, 2)).reshape(C, W, M)

    # ---- tile selection: big tiles to amortize per-step overhead, >= 2 tiles
    #      (v7x megacore) when there is enough work, capped for scoped VMEM. ----
    M_c = _round_up(M, _CHUNK)
    n_tiles = max(pl.cdiv(M_c, _TM_MAX), 2 if M_c >= 2 * _CHUNK else 1)
    TM = _round_up(pl.cdiv(M_c, n_tiles), _CHUNK)
    M_pad = n_tiles * TM
    if M_pad != M:
        x_cwm = jnp.pad(x_cwm, ((0, 0), (0, 0), (0, M_pad - M)))

    kernel = _make_kernel(TM // _CHUNK)

    out_cwm = pl.pallas_call(
        kernel,
        out_shape=jax.ShapeDtypeStruct((C, 7, M_pad), jnp.float32),
        grid=(n_tiles,),
        in_specs=[
            pl.BlockSpec(memory_space=pltpu.MemorySpace.SMEM),   # packed scalars
            pl.BlockSpec((7, 8), lambda i: (0, 0)),              # dense weight
            pl.BlockSpec((7, 1), lambda i: (0, 0)),              # dense bias
            pl.BlockSpec((C, W, TM), lambda i: (0, 0, i)),       # input lane tile
        ],
        out_specs=pl.BlockSpec((C, 7, TM), lambda i: (0, 0, i)),
        compiler_params=pltpu.CompilerParams(
            dimension_semantics=("parallel",),
            vmem_limit_bytes=_VMEM_LIMIT),
        cost_estimate=pl.CostEstimate(
            flops=624 * M_pad, transcendentals=0, bytes_accessed=180 * M_pad),
    )(scal, wd, bd.reshape(7, 1), x_cwm)

    # layout glue back: (C, 7, M) -> (N, C, H, 7)
    out = out_cwm[:, :, :M].reshape(C, 7, N, H)
    return jnp.transpose(out, (2, 0, 3, 1))


def _reference_forward(x, params):
    """Pure-JAX reference (un-fused conv + eval-mode BN) for correctness check."""
    (w1, b1, g1, be1, m1, v1,
     w2, b2, g2, be2, m2, v2, wd, bd) = params

    def bn(y, g, be, m, v):
        inv = g / jnp.sqrt(v + EPS)
        return (y - m[None, :, None, None]) * inv[None, :, None, None] \
            + be[None, :, None, None]

    y = jnp.einsum('oc,nchw->nohw', w1, x) + b1[None, :, None, None]
    y = jnp.maximum(bn(y, g1, be1, m1, v1), 0.0)
    y = jnp.einsum('oc,nchw->nohw', w2, y) + b2[None, :, None, None]
    y = jnp.maximum(bn(y, g2, be2, m2, v2), 0.0)
    return jnp.einsum('nchw,kw->nchk', y, wd) + bd


def make_params(key):
    ks = jax.random.split(key, 16)
    C = 3
    # conv1 / conv2: Conv2d(3, 3, 1x1) -> weight (3,3), bias (3,)
    w1 = jax.random.normal(ks[0], (C, C), jnp.float32) * 0.5
    b1 = jax.random.normal(ks[1], (C,), jnp.float32) * 0.1
    w2 = jax.random.normal(ks[2], (C, C), jnp.float32) * 0.5
    b2 = jax.random.normal(ks[3], (C,), jnp.float32) * 0.1
    # BatchNorm2d(3) eval-mode params (non-trivial running stats)
    g1 = 1.0 + 0.1 * jax.random.normal(ks[4], (C,), jnp.float32)
    be1 = 0.1 * jax.random.normal(ks[5], (C,), jnp.float32)
    m1 = 0.2 * jax.random.normal(ks[6], (C,), jnp.float32)
    v1 = 0.5 + jax.random.uniform(ks[7], (C,), jnp.float32)
    g2 = 1.0 + 0.1 * jax.random.normal(ks[8], (C,), jnp.float32)
    be2 = 0.1 * jax.random.normal(ks[9], (C,), jnp.float32)
    m2 = 0.2 * jax.random.normal(ks[10], (C,), jnp.float32)
    v2 = 0.5 + jax.random.uniform(ks[11], (C,), jnp.float32)
    # dense: Linear(8, 7) -> weight (7, 8), bias (7,)
    wd = jax.random.normal(ks[12], (7, 8), jnp.float32) * 0.3
    bd = jax.random.normal(ks[13], (7,), jnp.float32) * 0.1
    return (w1, b1, g1, be1, m1, v1, w2, b2, g2, be2, m2, v2, wd, bd)


if __name__ == "__main__":
    key = jax.random.PRNGKey(0)
    kx1, kx2, kp = jax.random.split(key, 3)
    params = make_params(kp)

    # Case 1: canonical small shape implied by the module (last dim must be 8
    # for Linear(8,7); channels must be 3 for the convs).
    x1 = jax.random.normal(kx1, (2, 3, 8, 8), jnp.float32)
    out1 = jax.block_until_ready(advanced_model_forward(x1, params))
    ref1 = _reference_forward(x1, params)
    assert out1.shape == (2, 3, 8, 7), out1.shape
    assert jnp.allclose(out1, ref1, atol=1e-4, rtol=1e-4), "mismatch (case 1)"

    # Case 2: larger spatial extent -> exercises the 2-tile parallel grid, the
    # padded lane tail and the in-kernel 256-lane strip loop.
    x2 = jax.random.normal(kx2, (4, 3, 160, 8), jnp.float32)
    out2 = jax.block_until_ready(advanced_model_forward(x2, params))
    ref2 = _reference_forward(x2, params)
    assert out2.shape == (4, 3, 160, 7), out2.shape
    assert jnp.allclose(out2, ref2, atol=1e-4, rtol=1e-4), "mismatch (case 2)"

    print("KERNEL_OK")
</pallas_src>

<mosaic_0001>
module attributes {stable_mosaic.version = 11 : i64} {
  func.func @kernel(%arg0: i32, %arg1: memref<24xf32, #tpu.memory_space<smem>>, %arg2: memref<7x8xf32, #tpu.memory_space<vmem>>, %arg3: memref<7x1xf32, #tpu.memory_space<vmem>>, %arg4: memref<3x8x256xf32, #tpu.memory_space<vmem>>, %arg5: memref<3x7x256xf32, #tpu.memory_space<vmem>>) attributes {dimension_semantics = [#tpu.dimension_semantics<parallel>], iteration_bounds = array<i64: 1>, scalar_prefetch = 0 : i64, scratch_operands = 0 : i64, tpu.core_type = #tpu.core_type<tc>, window_params = [{transform_indices = @transform_0, window_bounds = array<i64: 24>}, {pipeline_mode = #tpu.pipeline_mode<synchronous>, transform_indices = @transform_1, window_bounds = array<i64: 7, 8>}, {pipeline_mode = #tpu.pipeline_mode<synchronous>, transform_indices = @transform_2, window_bounds = array<i64: 7, 1>}, {transform_indices = @transform_3, window_bounds = array<i64: 3, 8, 256>}, {transform_indices = @transform_4, window_bounds = array<i64: 3, 7, 256>}]} {
    %c0 = arith.constant 0 : index
    %0 = memref.load %arg1[%c0] : memref<24xf32, #tpu.memory_space<smem>>
    %c1 = arith.constant 1 : index
    %1 = memref.load %arg1[%c1] : memref<24xf32, #tpu.memory_space<smem>>
    %c2 = arith.constant 2 : index
    %2 = memref.load %arg1[%c2] : memref<24xf32, #tpu.memory_space<smem>>
    %c3 = arith.constant 3 : index
    %3 = memref.load %arg1[%c3] : memref<24xf32, #tpu.memory_space<smem>>
    %c4 = arith.constant 4 : index
    %4 = memref.load %arg1[%c4] : memref<24xf32, #tpu.memory_space<smem>>
    %c5 = arith.constant 5 : index
    %5 = memref.load %arg1[%c5] : memref<24xf32, #tpu.memory_space<smem>>
    %c6 = arith.constant 6 : index
    %6 = memref.load %arg1[%c6] : memref<24xf32, #tpu.memory_space<smem>>
    %c7 = arith.constant 7 : index
    %7 = memref.load %arg1[%c7] : memref<24xf32, #tpu.memory_space<smem>>
    %c8 = arith.constant 8 : index
    %8 = memref.load %arg1[%c8] : memref<24xf32, #tpu.memory_space<smem>>
    %c9 = arith.constant 9 : index
    %9 = memref.load %arg1[%c9] : memref<24xf32, #tpu.memory_space<smem>>
    %c10 = arith.constant 10 : index
    %10 = memref.load %arg1[%c10] : memref<24xf32, #tpu.memory_space<smem>>
    %c11 = arith.constant 11 : index
    %11 = memref.load %arg1[%c11] : memref<24xf32, #tpu.memory_space<smem>>
    %c12 = arith.constant 12 : index
    %12 = memref.load %arg1[%c12] : memref<24xf32, #tpu.memory_space<smem>>
    %c13 = arith.constant 13 : index
    %13 = memref.load %arg1[%c13] : memref<24xf32, #tpu.memory_space<smem>>
    %c14 = arith.constant 14 : index
    %14 = memref.load %arg1[%c14] : memref<24xf32, #tpu.memory_space<smem>>
    %c15 = arith.constant 15 : index
    %15 = memref.load %arg1[%c15] : memref<24xf32, #tpu.memory_space<smem>>
    %c16 = arith.constant 16 : index
    %16 = memref.load %arg1[%c16] : memref<24xf32, #tpu.memory_space<smem>>
    %c17 = arith.constant 17 : index
    %17 = memref.load %arg1[%c17] : memref<24xf32, #tpu.memory_space<smem>>
    %c18 = arith.constant 18 : index
    %18 = memref.load %arg1[%c18] : memref<24xf32, #tpu.memory_space<smem>>
    %c19 = arith.constant 19 : index
    %19 = memref.load %arg1[%c19] : memref<24xf32, #tpu.memory_space<smem>>
    %c20 = arith.constant 20 : index
    %20 = memref.load %arg1[%c20] : memref<24xf32, #tpu.memory_space<smem>>
    %c21 = arith.constant 21 : index
    %21 = memref.load %arg1[%c21] : memref<24xf32, #tpu.memory_space<smem>>
    %c22 = arith.constant 22 : index
    %22 = memref.load %arg1[%c22] : memref<24xf32, #tpu.memory_space<smem>>
    %c23 = arith.constant 23 : index
    %23 = memref.load %arg1[%c23] : memref<24xf32, #tpu.memory_space<smem>>
    %c0_0 = arith.constant 0 : index
    %c0_1 = arith.constant 0 : index
    %24 = vector.load %arg2[%c0_0, %c0_1] : memref<7x8xf32, #tpu.memory_space<vmem>>, vector<7x8xf32>
    %c0_2 = arith.constant 0 : index
    %c0_3 = arith.constant 0 : index
    %25 = vector.load %arg3[%c0_2, %c0_3] : memref<7x1xf32, #tpu.memory_space<vmem>>, vector<7x1xf32>
    %c0_4 = arith.constant 0 : index
    %c0_5 = arith.constant 0 : index
    %c0_6 = arith.constant 0 : index
    %26 = vector.load %arg4[%c0_4, %c0_5, %c0_6] : memref<3x8x256xf32, #tpu.memory_space<vmem>>, vector<1x8x256xf32>
    %27 = vector.shape_cast %26 : vector<1x8x256xf32> to vector<8x256xf32>
    %c1_7 = arith.constant 1 : index
    %c0_8 = arith.constant 0 : index
    %c0_9 = arith.constant 0 : index
    %28 = vector.load %arg4[%c1_7, %c0_8, %c0_9] : memref<3x8x256xf32, #tpu.memory_space<vmem>>, vector<1x8x256xf32>
    %29 = vector.shape_cast %28 : vector<1x8x256xf32> to vector<8x256xf32>
    %c2_10 = arith.constant 2 : index
    %c0_11 = arith.constant 0 : index
    %c0_12 = arith.constant 0 : index
    %30 = vector.load %arg4[%c2_10, %c0_11, %c0_12] : memref<3x8x256xf32, #tpu.memory_space<vmem>>, vector<1x8x256xf32>
    %31 = vector.shape_cast %30 : vector<1x8x256xf32> to vector<8x256xf32>
    %32 = vector.broadcast %0 : f32 to vector<8x256xf32>
    %33 = arith.mulf %32, %27 : vector<8x256xf32>
    %34 = vector.broadcast %1 : f32 to vector<8x256xf32>
    %35 = arith.mulf %34, %29 : vector<8x256xf32>
    %36 = arith.addf %33, %35 : vector<8x256xf32>
    %37 = vector.broadcast %2 : f32 to vector<8x256xf32>
    %38 = arith.mulf %37, %31 : vector<8x256xf32>
    %39 = arith.addf %36, %38 : vector<8x256xf32>
    %40 = vector.broadcast %9 : f32 to vector<8x256xf32>
    %41 = arith.addf %39, %40 : vector<8x256xf32>
    %cst = arith.constant 0.000000e+00 : f32
    %42 = vector.broadcast %cst : f32 to vector<8x256xf32>
    %43 = arith.maximumf %41, %42 : vector<8x256xf32>
    %44 = vector.broadcast %3 : f32 to vector<8x256xf32>
    %45 = arith.mulf %44, %27 : vector<8x256xf32>
    %46 = vector.broadcast %4 : f32 to vector<8x256xf32>
    %47 = arith.mulf %46, %29 : vector<8x256xf32>
    %48 = arith.addf %45, %47 : vector<8x256xf32>
    %49 = vector.broadcast %5 : f32 to vector<8x256xf32>
    %50 = arith.mulf %49, %31 : vector<8x256xf32>
    %51 = arith.addf %48, %50 : vector<8x256xf32>
    %52 = vector.broadcast %10 : f32 to vector<8x256xf32>
    %53 = arith.addf %51, %52 : vector<8x256xf32>
    %cst_13 = arith.constant 0.000000e+00 : f32
    %54 = vector.broadcast %cst_13 : f32 to vector<8x256xf32>
    %55 = arith.maximumf %53, %54 : vector<8x256xf32>
    %56 = vector.broadcast %6 : f32 to vector<8x256xf32>
    %57 = arith.mulf %56, %27 : vector<8x256xf32>
    %58 = vector.broadcast %7 : f32 to vector<8x256xf32>
    %59 = arith.mulf %58, %29 : vector<8x256xf32>
    %60 = arith.addf %57, %59 : vector<8x256xf32>
    %61 = vector.broadcast %8 : f32 to vector<8x256xf32>
    %62 = arith.mulf %61, %31 : vector<8x256xf32>
    %63 = arith.addf %60, %62 : vector<8x256xf32>
    %64 = vector.broadcast %11 : f32 to vector<8x256xf32>
    %65 = arith.addf %63, %64 : vector<8x256xf32>
    %cst_14 = arith.constant 0.000000e+00 : f32
    %66 = vector.broadcast %cst_14 : f32 to vector<8x256xf32>
    %67 = arith.maximumf %65, %66 : vector<8x256xf32>
    %68 = vector.broadcast %12 : f32 to vector<8x256xf32>
    %69 = arith.mulf %68, %43 : vector<8x256xf32>
    %70 = vector.broadcast %13 : f32 to vector<8x256xf32>
    %71 = arith.mulf %70, %55 : vector<8x256xf32>
    %72 = arith.addf %69, %71 : vector<8x256xf32>
    %73 = vector.broadcast %14 : f32 to vector<8x256xf32>
    %74 = arith.mulf %73, %67 : vector<8x256xf32>
    %75 = arith.addf %72, %74 : vector<8x256xf32>
    %76 = vector.broadcast %21 : f32 to vector<8x256xf32>
    %77 = arith.addf %75, %76 : vector<8x256xf32>
    %cst_15 = arith.constant 0.000000e+00 : f32
    %78 = vector.broadcast %cst_15 : f32 to vector<8x256xf32>
    %79 = arith.maximumf %77, %78 : vector<8x256xf32>
    %80 = vector.broadcast %15 : f32 to vector<8x256xf32>
    %81 = arith.mulf %80, %43 : vector<8x256xf32>
    %82 = vector.broadcast %16 : f32 to vector<8x256xf32>
    %83 = arith.mulf %82, %55 : vector<8x256xf32>
    %84 = arith.addf %81, %83 : vector<8x256xf32>
    %85 = vector.broadcast %17 : f32 to vector<8x256xf32>
    %86 = arith.mulf %85, %67 : vector<8x256xf32>
    %87 = arith.addf %84, %86 : vector<8x256xf32>
    %88 = vector.broadcast %22 : f32 to vector<8x256xf32>
    %89 = arith.addf %87, %88 : vector<8x256xf32>
    %cst_16 = arith.constant 0.000000e+00 : f32
    %90 = vector.broadcast %cst_16 : f32 to vector<8x256xf32>
    %91 = arith.maximumf %89, %90 : vector<8x256xf32>
    %92 = vector.broadcast %18 : f32 to vector<8x256xf32>
    %93 = arith.mulf %92, %43 : vector<8x256xf32>
    %94 = vector.broadcast %19 : f32 to vector<8x256xf32>
    %95 = arith.mulf %94, %55 : vector<8x256xf32>
    %96 = arith.addf %93, %95 : vector<8x256xf32>
    %97 = vector.broadcast %20 : f32 to vector<8x256xf32>
    %98 = arith.mulf %97, %67 : vector<8x256xf32>
    %99 = arith.addf %96, %98 : vector<8x256xf32>
    %100 = vector.broadcast %23 : f32 to vector<8x256xf32>
    %101 = arith.addf %99, %100 : vector<8x256xf32>
    %cst_17 = arith.constant 0.000000e+00 : f32
    %102 = vector.broadcast %cst_17 : f32 to vector<8x256xf32>
    %103 = arith.maximumf %101, %102 : vector<8x256xf32>
    %cst_18 = arith.constant dense<0.000000e+00> : vector<7x256xf32>
    %104 = tpu.matmul %24, %79, %cst_18 {dimension_numbers = #tpu.dot_dimension_numbers<[1], [0], [0], [1], [0, 0, 1, 1], [], []>} : vector<7x8xf32>, vector<8x256xf32>, vector<7x256xf32> -> vector<7x256xf32>
    %105 = vector.broadcast %25 : vector<7x1xf32> to vector<7x256xf32>
    %106 = arith.addf %104, %105 : vector<7x256xf32>
    %c0_19 = arith.constant 0 : index
    %c0_20 = arith.constant 0 : index
    %c0_21 = arith.constant 0 : index
    %107 = vector.load %arg5[%c0_19, %c0_20, %c0_21] : memref<3x7x256xf32, #tpu.memory_space<vmem>>, vector<1x7x256xf32>
    %108 = vector.shape_cast %107 : vector<1x7x256xf32> to vector<7x256xf32>
    %109 = vector.shape_cast %106 : vector<7x256xf32> to vector<1x7x256xf32>
    tpu.vector_store %arg5[%c0_19, %c0_20, %c0_21], %109 {strides = array<i32>} : memref<3x7x256xf32, #tpu.memory_space<vmem>>, vector<1x7x256xf32>,
    %cst_22 = arith.constant dense<0.000000e+00> : vector<7x256xf32>
    %110 = tpu.matmul %24, %91, %cst_22 {dimension_numbers = #tpu.dot_dimension_numbers<[1], [0], [0], [1], [0, 0, 1, 1], [], []>} : vector<7x8xf32>, vector<8x256xf32>, vector<7x256xf32> -> vector<7x256xf32>
    %111 = vector.broadcast %25 : vector<7x1xf32> to vector<7x256xf32>
    %112 = arith.addf %110, %111 : vector<7x256xf32>
    %c1_23 = arith.constant 1 : index
    %c0_24 = arith.constant 0 : index
    %c0_25 = arith.constant 0 : index
    %113 = vector.load %arg5[%c1_23, %c0_24, %c0_25] : memref<3x7x256xf32, #tpu.memory_space<vmem>>, vector<1x7x256xf32>
    %114 = vector.shape_cast %113 : vector<1x7x256xf32> to vector<7x256xf32>
    %115 = vector.shape_cast %112 : vector<7x256xf32> to vector<1x7x256xf32>
    tpu.vector_store %arg5[%c1_23, %c0_24, %c0_25], %115 {strides = array<i32>} : memref<3x7x256xf32, #tpu.memory_space<vmem>>, vector<1x7x256xf32>,
    %cst_26 = arith.constant dense<0.000000e+00> : vector<7x256xf32>
    %116 = tpu.matmul %24, %103, %cst_26 {dimension_numbers = #tpu.dot_dimension_numbers<[1], [0], [0], [1], [0, 0, 1, 1], [], []>} : vector<7x8xf32>, vector<8x256xf32>, vector<7x256xf32> -> vector<7x256xf32>
    %117 = vector.broadcast %25 : vector<7x1xf32> to vector<7x256xf32>
    %118 = arith.addf %116, %117 : vector<7x256xf32>
    %c2_27 = arith.constant 2 : index
    %c0_28 = arith.constant 0 : index
    %c0_29 = arith.constant 0 : index
    %119 = vector.load %arg5[%c2_27, %c0_28, %c0_29] : memref<3x7x256xf32, #tpu.memory_space<vmem>>, vector<1x7x256xf32>
    %120 = vector.shape_cast %119 : vector<1x7x256xf32> to vector<7x256xf32>
    %121 = vector.shape_cast %118 : vector<7x256xf32> to vector<1x7x256xf32>
    tpu.vector_store %arg5[%c2_27, %c0_28, %c0_29], %121 {strides = array<i32>} : memref<3x7x256xf32, #tpu.memory_space<vmem>>, vector<1x7x256xf32>,
    return
  }
  func.func @transform_0(%arg0: i32) -> i32 {
    %c0_i32 = arith.constant 0 : i32
    %c0_i32_0 = arith.constant 0 : i32
    return %c0_i32 : i32
  }
  func.func @transform_1(%arg0: i32) -> (i32, i32) {
    %c0_i32 = arith.constant 0 : i32
    %c0_i32_0 = arith.constant 0 : i32
    %c0_i32_1 = arith.constant 0 : i32
    return %c0_i32, %c0_i32_0 : i32, i32
  }
  func.func @transform_2(%arg0: i32) -> (i32, i32) {
    %c0_i32 = arith.constant 0 : i32
    %c0_i32_0 = arith.constant 0 : i32
    %c0_i32_1 = arith.constant 0 : i32
    return %c0_i32, %c0_i32_0 : i32, i32
  }
  func.func @transform_3(%arg0: i32) -> (i32, i32, i32) {
    %c0_i32 = arith.constant 0 : i32
    %c0_i32_0 = arith.constant 0 : i32
    %c0_i32_1 = arith.constant 0 : i32
    return %c0_i32, %c0_i32_0, %arg0 : i32, i32, i32
  }
  func.func @transform_4(%arg0: i32) -> (i32, i32, i32) {
    %c0_i32 = arith.constant 0 : i32
    %c0_i32_0 = arith.constant 0 : i32
    %c0_i32_1 = arith.constant 0 : i32
    return %c0_i32, %c0_i32_0, %arg0 : i32, i32, i32
  }
}

</mosaic_0001>

<bundles_post_ra>
// kernel: advanced_model_forward.1
= control target key start
LH: loop header
LB: loop body
LE: loop exit
PB: predicated region body
PF: predicated region fallthrough
CT: control target
= control target key end

     0   :  { %9 = vsyncpa [#allocation3], 0  ;;  %s601_s0 = inlined_call_operand.vmem [shape: f32[24], index: 0, kind: input, shape index: {}]   ;;  %s602_s1 = inlined_call_operand.vmem [shape: f32[7,8], index: 1, kind: input, shape index: {}]   ;;  %s603_s2 = inlined_call_operand.vmem [shape: f32[7,1], index: 2, kind: input, shape index: {}]   ;;  %s604_s3 = inlined_call_operand.vmem [shape: f32[3,8,256], index: 3, kind: input, shape index: {}]   ;;  %s605_s4 = inlined_call_operand.vmem [shape: f32[3,7,256], index: 4, kind: output, shape index: {}]  }
   0x1   :  { %s16_s17 = sshll.u32 %s601_s0, 4  ;;  %s17_s17 = int_to_ptr.vmem [resolvable:$true] %s16_s17 }
   0x2   :  { %s445_s18 = scalar_lea.vmem %s17_s17, 16  ;;  %p450_p1 = scmp.lt.s32.totalorder %s17_s17, %s17_s17 }
   0x3   :  { %p446_p0 = scmp.ne.s32.totalorder %s17_s17, %s445_s18  ;;  %p451_p2 = scmp.lt.s32.totalorder %s445_s18, %s445_s18 }
   0x5   :  { %p452_p3 = por %p451_p2, %p450_p1 }
   0x7   :  { %p453_p4 = pnand %p452_p3, %p446_p0 }
   0x9   :  { %456 = shalt.err (!%p453_p4)
}
   0xa   :  { %s459_s19 = smov [#allocation2]  }
   0xb   :  { %19 = dma.vmem_to_smem %s17_s17, 16, %s459_s19, [#allocation3]  }
   0xc   :  { %457 = dma.done.wait [#allocation3], 16  }
   0xd   :  { %458 = vsyncadd [#allocation3], 4294967280 }
   0xe   :  { %29 = sfence }
   0xf   :  { %s30_s20 = sld [smem:[#allocation2]]  ;;  %v460_v0 = vmov 0.0   ;;  %v461_v1 = vmov 0   ;;  %v55_v2 = vld [vmem:[%s603_s2] sm:$0x7f]  ;;  %v57_v3 = vld [vmem:[%s604_s3 + $0x8] sm:$0xff] }
  0x10   :  { %s407_s21 = sld [smem:[#allocation2 + $0x1]]  ;;  %245 = vmatprep.mubr.f32.mxu0 %v460_v0  ;;  %318 = vmatprep.mubr.f32.mxu1 %v460_v0  ;;  %v56_v4 = vld [vmem:[%s604_s3] sm:$0xff]  ;;  %v431_v5 = vld [vmem:[%s604_s3 + $0x18] sm:$0xff]  ;;  %v430_v6 = vld [vmem:[%s604_s3 + $0x10] sm:$0xff]  ;;  %vm177_vm0 = vcmask 64512  }
  0x11   :  { %s408_s0 = sld [smem:[#allocation2 + $0x2]]  ;;  %444 = vset.pattern.permute.xlu0 %v461_v1  ;;  %v433_v7 = vld [vmem:[%s604_s3 + $0x28] sm:$0xff]  ;;  %v432_v9 = vld [vmem:[%s604_s3 + $0x20] sm:$0xff] }
  0x12   :  { %s492_s22 = sld [smem:[#allocation2 + $0x3]]  ;;  %174 = vperm.xlu0 %444, %v55_v2  }
  0x13   :  { %s497_s25 = sld [smem:[#allocation2 + $0x4]] }
  0x14   :  { %s505_s30 = sld [smem:[#allocation2 + $0x5]] }
  0x15   :  { %s513_s2 = sld [smem:[#allocation2 + $0x6]]  ;;  %v64_v8 = vstv %s30_s20 }
  0x16   :  { %s521_s13 = sld [smem:[#allocation2 + $0x7]]  ;;  %v66_v10 = vmul.f32 %v64_v8, %v57_v3  ;;  %v67_v11 = vstv %s407_s21  ;;  %v65_v12 = vmul.f32 %v64_v8, %v56_v4 }
  0x17   :  { %s523_s14 = sld [smem:[#allocation2 + $0x8]]  ;;  %v69_v13 = vmul.f32 %v431_v5, %v67_v11  ;;  %v72_v14 = vstv %s408_s0  ;;  %v68_v15 = vmul.f32 %v430_v6, %v67_v11 }
  0x18   :  { %s525_s15 = sld [smem:[#allocation2 + $0x9]]  ;;  %v74_v16 = vmul.f32 %v433_v7, %v72_v14  ;;  %v82_v17 = vstv %s492_s22  ;;  %v73_v18 = vmul.f32 %v432_v9, %v72_v14 }
  0x19   :  { %s528_s16 = sld [smem:[#allocation2 + $0xa]]  ;;  %v71_v19 = vadd.f32 %v69_v13, %v66_v10  ;;  %v84_v20 = vmul.f32 %v82_v17, %v57_v3  ;;  %v85_v21 = vstv %s497_s25  ;;  %v70_v22 = vadd.f32 %v68_v15, %v65_v12 }
  0x1a   :  { %s531_s3 = sld [smem:[#allocation2 + $0xb]]  ;;  %v87_v23 = vmul.f32 %v431_v5, %v85_v21  ;;  %v90_v24 = vstv %s505_s30  ;;  %v83_v25 = vmul.f32 %v82_v17, %v56_v4  ;;  %v86_v26 = vmul.f32 %v430_v6, %v85_v21 }
  0x1b   :  { %s534_s17 = sld [smem:[#allocation2 + $0xc]]  ;;  %v76_v27 = vadd.f32 %v74_v16, %v71_v19  ;;  %v92_v28 = vmul.f32 %v433_v7, %v90_v24  ;;  %v100_v29 = vstv %s513_s2  ;;  %v75_v30 = vadd.f32 %v73_v18, %v70_v22 }
  0x1c   :  { %s537_s18 = sld [smem:[#allocation2 + $0xd]]  ;;  %v89_v31 = vadd.f32 %v87_v23, %v84_v20  ;;  %v102_v32 = vmul.f32 %v100_v29, %v57_v3  ;;  %v103_v33 = vstv %s521_s13  ;;  %v88_v34 = vadd.f32 %v86_v26, %v83_v25 }
  0x1d   :  { %s540_s19 = sld [smem:[#allocation2 + $0xe]]  ;;  %v105_v35 = vmul.f32 %v431_v5, %v103_v33  ;;  %v108_v36 = vstv %s523_s14  ;;  %v91_v37 = vmul.f32 %v432_v9, %v90_v24  ;;  %v101_v38 = vmul.f32 %v100_v29, %v56_v4 }
  0x1e   :  { %s543_s20 = sld [smem:[#allocation2 + $0x15]]  ;;  %v77_v39 = vstv %s525_s15  ;;  %v94_v40 = vadd.f32 %v92_v28, %v89_v31  ;;  %v110_v41 = vmul.f32 %v433_v7, %v108_v36  ;;  %v104_v42 = vmul.f32 %v430_v6, %v103_v33 }
  0x1f   :  { %v79_v43 = vadd.f32 %v77_v39, %v76_v27  ;;  %v95_v44 = vstv %s528_s16  ;;  %v107_v45 = vadd.f32 %v105_v35, %v102_v32  ;;  %v78_v46 = vadd.f32 %v77_v39, %v75_v30  ;;  %s547_s21 = sld [smem:[#allocation2 + $0x12]] }
  0x20   :  { %v97_v47 = vadd.f32 %v95_v44, %v94_v40  ;;  %v113_v48 = vstv %s531_s3  ;;  %v93_v49 = vadd.f32 %v91_v37, %v88_v34  ;;  %v106_v50 = vadd.f32 %v104_v42, %v101_v38  ;;  %s550_s0 = sld [smem:[#allocation2 + $0x13]] }
  0x21   :  { %v81_v51 = vmax.f32 %v79_v43, 0.0  ;;  %v112_v52 = vadd.f32 %v110_v41, %v107_v45  ;;  %v118_v53 = vstv %s534_s17  ;;  %v80_v54 = vmax.f32 %v78_v46, 0.0  ;;  %s553_s22 = sld [smem:[#allocation2 + $0x14]]  ;;  %v54_v45 = vld [vmem:[%s602_s1] sm:$0x7f] }
  0x22   :  { %v99_v55 = vmax.f32 %v97_v47, 0.0  ;;  %v121_v56 = vstv %s537_s18  ;;  %v96_v57 = vadd.f32 %v95_v44, %v93_v49  ;;  %v109_v58 = vmul.f32 %v432_v9, %v108_v36  ;;  %s556_s23 = sld [smem:[#allocation2 + $0x17]] }
  0x23   :  { %v115_v59 = vadd.f32 %v113_v48, %v112_v52  ;;  %v120_v60 = vmul.f32 %v118_v53, %v81_v51  ;;  %v126_v61 = vstv %s540_s19  ;;  %s559_s24 = sld [smem:[#allocation2 + $0xf]]  ;;  %v119_v2 = vmul.f32 %v118_v53, %v80_v54 }
  0x24   :  { %v123_v62 = vmul.f32 %v121_v56, %v99_v55  ;;  %v98_v63 = vmax.f32 %v96_v57, 0.0  ;;  %v111_v1 = vadd.f32 %v109_v58, %v106_v50  ;;  %s561_s25 = sld [smem:[#allocation2 + $0x10]]  ;;  %v131_v4 = vstv %s543_s20 }
  0x25   :  { %v117_v3 = vmax.f32 %v115_v59, 0.0  ;;  %v154_v5 = vstv %s547_s21  ;;  %s565_s26 = sld [smem:[#allocation2 + $0x11]] }
  0x26   :  { %v125_v6 = vadd.f32 %v123_v62, %v120_v60  ;;  %v114_v7 = vadd.f32 %v113_v48, %v111_v1  ;;  %v122_v8 = vmul.f32 %v121_v56, %v98_v63  ;;  %v155_v9 = vmul.f32 %v154_v5, %v80_v54  ;;  %s569_s27 = sld [smem:[#allocation2 + $0x16]] }
  0x27   :  { %v128_v10 = vmul.f32 %v126_v61, %v117_v3  ;;  %v156_v11 = vmul.f32 %v154_v5, %v81_v51  ;;  %v157_v12 = vstv %s550_s0  ;;  %v162_v13 = vstv %s553_s22 }
  0x28   :  { %v116_v14 = vmax.f32 %v114_v7, 0.0  ;;  %v124_v15 = vadd.f32 %v122_v8, %v119_v2  ;;  %v158_v16 = vmul.f32 %v157_v12, %v98_v63  ;;  %v159_v17 = vmul.f32 %v157_v12, %v99_v55 }
  0x29   :  { %v130_v18 = vadd.f32 %v128_v10, %v125_v6  ;;  %v164_v19 = vmul.f32 %v162_v13, %v117_v3  ;;  %v167_v20 = vstv %s556_s23  ;;  %v136_v21 = vstv %s559_s24 }
  0x2a   :  { %v127_v22 = vmul.f32 %v126_v61, %v116_v14  ;;  %v160_v23 = vadd.f32 %v158_v16, %v155_v9  ;;  %v161_v24 = vadd.f32 %v159_v17, %v156_v11  ;;  %v163_v25 = vmul.f32 %v162_v13, %v116_v14 }
  0x2b   :  { %v133_v26 = vadd.f32 %v131_v4, %v130_v18  ;;  %v138_v27 = vmul.f32 %v136_v21, %v81_v51  ;;  %v139_v28 = vstv %s561_s25  ;;  %v144_v29 = vstv %s565_s26 }
  0x2c   :  { %v129_v30 = vadd.f32 %v127_v22, %v124_v15  ;;  %v165_v31 = vadd.f32 %v163_v25, %v160_v23  ;;  %v166_v32 = vadd.f32 %v164_v19, %v161_v24  ;;  %v141_v33 = vmul.f32 %v139_v28, %v99_v55 }
  0x2d   :  { %v135_v34 = vmax.f32 %v133_v26, 0.0  ;;  %v146_v35 = vmul.f32 %v144_v29, %v117_v3  ;;  %v137_v36 = vmul.f32 %v136_v21, %v80_v54  ;;  %v149_v41 = vstv %s569_s27 }
  0x2e   :  { %v132_v37 = vadd.f32 %v131_v4, %v129_v30  ;;  %v168_v38 = vadd.f32 %v167_v20, %v165_v31  ;;  %v169_v39 = vadd.f32 %v167_v20, %v166_v32  ;;  %v143_v40 = vadd.f32 %v141_v33, %v138_v27 }
  0x2f   :  { %211 = vmatprep.subr.mxu0 %v135_v34  ;;  %v140_v42 = vmul.f32 %v139_v28, %v98_v63  ;;  %v145_v43 = vmul.f32 %v144_v29, %v116_v14 }
  0x30   :  { %v134_v44 = vmax.f32 %v132_v37, 0.0  ;;  %v170_v46 = vmax.f32 %v168_v38, 0.0  ;;  %v171_v47 = vmax.f32 %v169_v39, 0.0  ;;  %v148_v48 = vadd.f32 %v146_v35, %v143_v40 }
  0x31   :  { %v142_v49 = vadd.f32 %v140_v42, %v137_v36 }
  0x32   :  { %212 = vmatpush1.msra.mxu0 %v134_v44  ;;  %v151_v50 = vadd.f32 %v149_v41, %v148_v48 }
  0x33   :  { %434 = vmatmul.mubr.msk.f32.vlgmr.msra.gmra.mxu0 %vm177_vm0, %v54_v45  ;;  %358 = vmatprep.subr.mxu0 %v171_v47  ;;  %v147_v51 = vadd.f32 %v145_v43, %v142_v49 }
  0x34   :  { %v153_v52 = vmax.f32 %v151_v50, 0.0  ;;  %359 = vmatpush1.msra.mxu0 %v170_v46  ;;  %392 = vmatprep.mubr.f32.mxu0 %v460_v0 }
  0x35   :  { %v150_v53 = vadd.f32 %v149_v41, %v147_v51 }
  0x36   :  { %284 = vmatprep.subr.mxu1 %v153_v52 }
  0x37   :  { %v152_v54 = vmax.f32 %v150_v53, 0.0  ;;  %438 = vmatmul.mubr.msk.f32.vlgmr.msra.gmra.mxu0 %vm177_vm0, %v54_v45 }
  0x39   :  { %285 = vmatpush1.msra.mxu1 %v152_v54 }
  0x3a   :  { %435 = vmatmul.mubr.msk.f32.vlgmr.msra.gmra.mxu1 %vm177_vm0, %v54_v45 }
  0x8d   :  { %v175_v55 = vpop.permute.xlu0 %174 }
  0xf3   :  { %v247_v56 = vpop.f32.mrf.mxu0 }
  0xf4   :  { %v248_v57 = vadd.f32 %v247_v56, %v175_v55 }
  0xf5   :  { %v249_v58 = vpop.f32.mrf.mxu0 }
  0xf6   :  { %252 = vst [vmem:[%s605_s4] sm:$0x7f] %v248_v57  ;;  %v250_v59 = vadd.f32 %v249_v58, %v175_v55 }
  0xf7   :  { %v394_v60 = vpop.f32.mrf.mxu0 }
  0xf8   :  { %253 = vst [vmem:[%s605_s4 + $0x8] sm:$0x7f] %v250_v59  ;;  %v395_v0 = vadd.f32 %v394_v60, %v175_v55 }
  0xf9   :  { %v396_v61 = vpop.f32.mrf.mxu0 }
  0xfa   :  { %v320_v62 = vpop.f32.mrf.mxu1  ;;  %439 = vst [vmem:[%s605_s4 + $0x20] sm:$0x7f] %v395_v0  ;;  %v397_v63 = vadd.f32 %v396_v61, %v175_v55 }
  0xfb   :  { %v321_v1 = vadd.f32 %v320_v62, %v175_v55 }
  0xfc   :  { %v322_v2 = vpop.f32.mrf.mxu1  ;;  %440 = vst [vmem:[%s605_s4 + $0x28] sm:$0x7f] %v397_v63 }
  0xfd   :  { %436 = vst [vmem:[%s605_s4 + $0x10] sm:$0x7f] %v321_v1  ;;  %v323_v3 = vadd.f32 %v322_v2, %v175_v55 }
  0xff   :  { %437 = vst [vmem:[%s605_s4 + $0x18] sm:$0x7f] %v323_v3 }
 0x100   :  { %406 = vsyncpa [#allocation3], 1 }

</bundles_post_ra>
